<compile_context>
chip_gen: v7x
topology: tpu7x:2x2x1
jax: 0.10.0
libtpu: 0.0.40
codegen_flags: <defaults>
</compile_context>

<pallas_src>
import functools

import jax
import jax.numpy as jnp
from jax.experimental import pallas as pl
from jax.experimental.pallas import tpu as pltpu


def _round_up(x, m):
    return ((x + m - 1) // m) * m


def _choose_tm(B):
    """Batch tile: >=2 grid programs when possible (v7x megacore), 256-512 rows when big."""
    if B <= 16:
        return _round_up(B, 8)
    if B <= 1024:
        return min(512, _round_up(pl.cdiv(B, 2), 8))
    return 512


def _mlp_fused_kernel(x_ref, *refs, num_layers: int):
    """refs = (w0, b0, w1, b1, ..., w_{L-1}, b_{L-1}, o_ref).

    Weights are [Din_p, Dout_p] (bf16 or f32); biases are [1, Dout_p] f32.
    Matmuls run on the MXU in the weight dtype with f32 accumulation; bias add and
    ReLU run on the VPU in f32.  ReLU after every layer except the last.
    """
    o_ref = refs[-1]
    h = x_ref[...]
    for layer in range(num_layers):
        w_ref = refs[2 * layer]
        b_ref = refs[2 * layer + 1]
        acc = jnp.dot(h.astype(w_ref.dtype), w_ref[...],
                      preferred_element_type=jnp.float32)
        acc = acc + b_ref[...].astype(jnp.float32)      # broadcast (1, Dout) over rows
        if layer < num_layers - 1:
            acc = jnp.maximum(acc, 0.0)                 # fused ReLU (f32 epilogue)
        h = acc
    o_ref[...] = h.astype(o_ref.dtype)


def mlp_forward(params, x, *, out_dim, single_buffer_weights=True):
    """params: list of (w_t [Din_p, Dout_p], b [1, Dout_p]); x: [B, Din] -> [B, out_dim]."""
    B, Din = x.shape
    num_layers = len(params)
    Din_p = params[0][0].shape[0]          # padded (128-multiple) input width
    Dout_pad = params[-1][0].shape[1]      # padded (128-multiple) logits width

    # Lane-dense x: append zero feature columns to match the zero-padded rows of W0.
    if Din < Din_p:
        x = jnp.pad(x, ((0, 0), (0, Din_p - Din)))

    tm = _choose_tm(B)
    grid = (pl.cdiv(B, tm),)

    const_idx = lambda i: (0, 0)
    # Constant-index weights/biases: single-buffer them (no re-fetch across tiles).
    w_kwargs = dict(pipeline_mode=pl.Buffered(1)) if single_buffer_weights else {}

    in_specs = [pl.BlockSpec((tm, Din_p), lambda i: (i, 0))]
    flat_params = []
    flops = 0
    param_bytes = 0
    max_width = Din_p
    for (w, b) in params:
        din_p, dout_p = w.shape
        in_specs.append(pl.BlockSpec((din_p, dout_p), const_idx, **w_kwargs))
        in_specs.append(pl.BlockSpec((1, dout_p), const_idx, **w_kwargs))
        flat_params.extend([w, b])
        flops += 2 * B * din_p * dout_p
        param_bytes += w.size * w.dtype.itemsize + b.size * b.dtype.itemsize
        max_width = max(max_width, dout_p)

    # Explicit VMEM budget: params (x buffer count) + double-buffered x/out tiles
    # + f32 intermediates, with 2x headroom; clamp to [32 MiB, 60 MiB] (v7x has 64 MiB).
    itemsize_x = x.dtype.itemsize
    wbuf = 1 if single_buffer_weights else 2
    vmem_needed = (wbuf * param_bytes
                   + 2 * tm * Din_p * itemsize_x
                   + 2 * tm * Dout_pad * itemsize_x
                   + 4 * tm * max_width * (num_layers + 1))
    vmem_limit = int(min(max(2 * vmem_needed + (4 << 20), 32 << 20), 60 << 20))

    bytes_accessed = (x.size * itemsize_x + B * Dout_pad * itemsize_x + param_bytes)

    kernel = functools.partial(_mlp_fused_kernel, num_layers=num_layers)
    out_padded = pl.pallas_call(
        kernel,
        out_shape=jax.ShapeDtypeStruct((B, Dout_pad), x.dtype),
        grid=grid,
        in_specs=in_specs,
        # Lane-dense logits store; wrapper slices back to out_dim.
        out_specs=pl.BlockSpec((tm, Dout_pad), lambda i: (i, 0)),
        compiler_params=pltpu.CompilerParams(
            dimension_semantics=("parallel",),
            vmem_limit_bytes=vmem_limit),
        cost_estimate=pl.CostEstimate(
            flops=flops, transcendentals=0, bytes_accessed=bytes_accessed),
    )(x, *flat_params)

    return out_padded[:, :out_dim]


def init_mlp_params(key, input_features_count, hidden_layer_sizes, num_classes,
                    param_dtype=jnp.bfloat16, bias_dtype=jnp.float32):
    """Deterministic init mimicking nn.Linear default (uniform +-1/sqrt(fan_in)).

    Returns:
      params     : kernel layout -- weights pre-transposed to [Din_p, Dout_p]
                   (param_dtype, zero-padded to 128-multiple widths on BOTH dims),
                   biases as [1, Dout_p] in bias_dtype (f32 epilogue).
      raw_params : PyTorch layout ([Dout, Din], [Dout]) in f32 for the reference check.
      out_dim    : logical output width (num_classes, or 1 if num_classes == 2).
    """
    out_dim = num_classes - 1 if num_classes == 2 else num_classes
    layer_dims = list(hidden_layer_sizes) + [out_dim]

    params, raw_params = [], []
    prev = input_features_count                       # logical fan-in
    prev_p = _round_up(input_features_count, 128)     # padded fan-in seen by the kernel
    for dout in layer_dims:
        key, kw, kb = jax.random.split(key, 3)
        bound = 1.0 / (prev ** 0.5)
        w = jax.random.uniform(kw, (dout, prev), jnp.float32, -bound, bound)
        b = jax.random.uniform(kb, (dout,), jnp.float32, -bound, bound)
        raw_params.append((w, b))

        dout_p = _round_up(dout, 128)
        w_t = jnp.zeros((prev_p, dout_p), param_dtype).at[:prev, :dout].set(
            w.T.astype(param_dtype))
        b_p = jnp.zeros((1, dout_p), bias_dtype).at[0, :dout].set(b.astype(bias_dtype))
        params.append((w_t, b_p))

        prev, prev_p = dout, dout_p
    return params, raw_params, out_dim


if __name__ == "__main__":
    key = jax.random.PRNGKey(0)

    batch = 64
    input_features_count = 32
    hidden_layer_sizes = [64, 32]
    num_classes = 3   # -> output dim 3 (would be 1 if num_classes == 2)

    kx, kp = jax.random.split(key)
    x = jax.random.normal(kx, (batch, input_features_count), jnp.float32)
    params, raw_params, out_dim = init_mlp_params(
        kp, input_features_count, hidden_layer_sizes, num_classes,
        param_dtype=jnp.bfloat16)

    def run(single_buffer):
        fwd = jax.jit(functools.partial(
            mlp_forward, out_dim=out_dim, single_buffer_weights=single_buffer))
        return jax.block_until_ready(fwd(params, x))

    try:
        logits = run(True)
    except Exception:
        # Fallback if Buffered(1) single-buffering is rejected by this JAX/Mosaic build.
        logits = run(False)

    # Plain-JAX reference (PyTorch semantics: x @ W.T + b, ReLU on hidden layers),
    # mirroring the kernel's numerics: bf16 MXU inputs, f32 accumulation & epilogue.
    compute_dtype = params[0][0].dtype
    h = x
    for li, (w, b) in enumerate(raw_params):
        lhs = h.astype(compute_dtype).astype(jnp.float32)
        rhs = w.T.astype(compute_dtype).astype(jnp.float32)
        h = lhs @ rhs + b
        if li < len(raw_params) - 1:
            h = jnp.maximum(h, 0.0)
    ref = h

    assert logits.shape == (batch, out_dim)
    assert jnp.allclose(logits, ref, atol=1e-3, rtol=1e-3), (
        float(jnp.max(jnp.abs(logits - ref))))

    print("KERNEL_OK")
</pallas_src>

<mosaic_0001>
module attributes {stable_mosaic.version = 11 : i64} {
  func.func @_mlp_fused_kernel(%arg0: i32, %arg1: memref<32x128xf32, #tpu.memory_space<vmem>>, %arg2: memref<128x128xbf16, #tpu.memory_space<vmem>>, %arg3: memref<1x128xf32, #tpu.memory_space<vmem>>, %arg4: memref<128x128xbf16, #tpu.memory_space<vmem>>, %arg5: memref<1x128xf32, #tpu.memory_space<vmem>>, %arg6: memref<128x128xbf16, #tpu.memory_space<vmem>>, %arg7: memref<1x128xf32, #tpu.memory_space<vmem>>, %arg8: memref<32x128xf32, #tpu.memory_space<vmem>>) attributes {dimension_semantics = [#tpu.dimension_semantics<parallel>], iteration_bounds = array<i64: 2>, scalar_prefetch = 0 : i64, scratch_operands = 0 : i64, tpu.core_type = #tpu.core_type<tc>, window_params = [{transform_indices = @transform_0, window_bounds = array<i64: 32, 128>}, {pipeline_mode = #tpu.pipeline_mode<synchronous>, transform_indices = @transform_1, window_bounds = array<i64: 128, 128>}, {pipeline_mode = #tpu.pipeline_mode<synchronous>, transform_indices = @transform_2, window_bounds = array<i64: 1, 128>}, {pipeline_mode = #tpu.pipeline_mode<synchronous>, transform_indices = @transform_3, window_bounds = array<i64: 128, 128>}, {pipeline_mode = #tpu.pipeline_mode<synchronous>, transform_indices = @transform_4, window_bounds = array<i64: 1, 128>}, {pipeline_mode = #tpu.pipeline_mode<synchronous>, transform_indices = @transform_5, window_bounds = array<i64: 128, 128>}, {pipeline_mode = #tpu.pipeline_mode<synchronous>, transform_indices = @transform_6, window_bounds = array<i64: 1, 128>}, {transform_indices = @transform_7, window_bounds = array<i64: 32, 128>}]} {
    %c0 = arith.constant 0 : index
    %c0_0 = arith.constant 0 : index
    %0 = vector.load %arg1[%c0, %c0_0] : memref<32x128xf32, #tpu.memory_space<vmem>>, vector<32x128xf32>
    %1 = arith.truncf %0 : vector<32x128xf32> to vector<32x128xbf16>
    %c0_1 = arith.constant 0 : index
    %c0_2 = arith.constant 0 : index
    %2 = vector.load %arg2[%c0_1, %c0_2] : memref<128x128xbf16, #tpu.memory_space<vmem>>, vector<128x128xbf16>
    %cst = arith.constant dense<0.000000e+00> : vector<32x128xf32>
    %3 = tpu.matmul %1, %2, %cst {dimension_numbers = #tpu.dot_dimension_numbers<[1], [0], [0], [1], [0, 0, 1, 1], [], []>} : vector<32x128xbf16>, vector<128x128xbf16>, vector<32x128xf32> -> vector<32x128xf32>
    %c0_3 = arith.constant 0 : index
    %c0_4 = arith.constant 0 : index
    %4 = vector.load %arg3[%c0_3, %c0_4] : memref<1x128xf32, #tpu.memory_space<vmem>>, vector<1x128xf32>
    %5 = vector.broadcast %4 : vector<1x128xf32> to vector<32x128xf32>
    %6 = arith.addf %3, %5 : vector<32x128xf32>
    %cst_5 = arith.constant 0.000000e+00 : f32
    %7 = vector.broadcast %cst_5 : f32 to vector<32x128xf32>
    %8 = arith.maximumf %6, %7 : vector<32x128xf32>
    %9 = arith.truncf %8 : vector<32x128xf32> to vector<32x128xbf16>
    %c0_6 = arith.constant 0 : index
    %c0_7 = arith.constant 0 : index
    %10 = vector.load %arg4[%c0_6, %c0_7] : memref<128x128xbf16, #tpu.memory_space<vmem>>, vector<128x128xbf16>
    %cst_8 = arith.constant dense<0.000000e+00> : vector<32x128xf32>
    %11 = tpu.matmul %9, %10, %cst_8 {dimension_numbers = #tpu.dot_dimension_numbers<[1], [0], [0], [1], [0, 0, 1, 1], [], []>} : vector<32x128xbf16>, vector<128x128xbf16>, vector<32x128xf32> -> vector<32x128xf32>
    %c0_9 = arith.constant 0 : index
    %c0_10 = arith.constant 0 : index
    %12 = vector.load %arg5[%c0_9, %c0_10] : memref<1x128xf32, #tpu.memory_space<vmem>>, vector<1x128xf32>
    %13 = vector.broadcast %12 : vector<1x128xf32> to vector<32x128xf32>
    %14 = arith.addf %11, %13 : vector<32x128xf32>
    %cst_11 = arith.constant 0.000000e+00 : f32
    %15 = vector.broadcast %cst_11 : f32 to vector<32x128xf32>
    %16 = arith.maximumf %14, %15 : vector<32x128xf32>
    %17 = arith.truncf %16 : vector<32x128xf32> to vector<32x128xbf16>
    %c0_12 = arith.constant 0 : index
    %c0_13 = arith.constant 0 : index
    %18 = vector.load %arg6[%c0_12, %c0_13] : memref<128x128xbf16, #tpu.memory_space<vmem>>, vector<128x128xbf16>
    %cst_14 = arith.constant dense<0.000000e+00> : vector<32x128xf32>
    %19 = tpu.matmul %17, %18, %cst_14 {dimension_numbers = #tpu.dot_dimension_numbers<[1], [0], [0], [1], [0, 0, 1, 1], [], []>} : vector<32x128xbf16>, vector<128x128xbf16>, vector<32x128xf32> -> vector<32x128xf32>
    %c0_15 = arith.constant 0 : index
    %c0_16 = arith.constant 0 : index
    %20 = vector.load %arg7[%c0_15, %c0_16] : memref<1x128xf32, #tpu.memory_space<vmem>>, vector<1x128xf32>
    %21 = vector.broadcast %20 : vector<1x128xf32> to vector<32x128xf32>
    %22 = arith.addf %19, %21 : vector<32x128xf32>
    %c0_17 = arith.constant 0 : index
    %c0_18 = arith.constant 0 : index
    %23 = vector.load %arg8[%c0_17, %c0_18] : memref<32x128xf32, #tpu.memory_space<vmem>>, vector<32x128xf32>
    tpu.vector_store %arg8[%c0_17, %c0_18], %22 {strides = array<i32>} : memref<32x128xf32, #tpu.memory_space<vmem>>, vector<32x128xf32>,
    return
  }
  func.func @transform_0(%arg0: i32) -> (i32, i32) {
    %c0_i32 = arith.constant 0 : i32
    %c0_i32_0 = arith.constant 0 : i32
    return %arg0, %c0_i32 : i32, i32
  }
  func.func @transform_1(%arg0: i32) -> (i32, i32) {
    %c0_i32 = arith.constant 0 : i32
    %c0_i32_0 = arith.constant 0 : i32
    %c0_i32_1 = arith.constant 0 : i32
    return %c0_i32, %c0_i32_0 : i32, i32
  }
  func.func @transform_2(%arg0: i32) -> (i32, i32) {
    %c0_i32 = arith.constant 0 : i32
    %c0_i32_0 = arith.constant 0 : i32
    %c0_i32_1 = arith.constant 0 : i32
    return %c0_i32, %c0_i32_0 : i32, i32
  }
  func.func @transform_3(%arg0: i32) -> (i32, i32) {
    %c0_i32 = arith.constant 0 : i32
    %c0_i32_0 = arith.constant 0 : i32
    %c0_i32_1 = arith.constant 0 : i32
    return %c0_i32, %c0_i32_0 : i32, i32
  }
  func.func @transform_4(%arg0: i32) -> (i32, i32) {
    %c0_i32 = arith.constant 0 : i32
    %c0_i32_0 = arith.constant 0 : i32
    %c0_i32_1 = arith.constant 0 : i32
    return %c0_i32, %c0_i32_0 : i32, i32
  }
  func.func @transform_5(%arg0: i32) -> (i32, i32) {
    %c0_i32 = arith.constant 0 : i32
    %c0_i32_0 = arith.constant 0 : i32
    %c0_i32_1 = arith.constant 0 : i32
    return %c0_i32, %c0_i32_0 : i32, i32
  }
  func.func @transform_6(%arg0: i32) -> (i32, i32) {
    %c0_i32 = arith.constant 0 : i32
    %c0_i32_0 = arith.constant 0 : i32
    %c0_i32_1 = arith.constant 0 : i32
    return %c0_i32, %c0_i32_0 : i32, i32
  }
  func.func @transform_7(%arg0: i32) -> (i32, i32) {
    %c0_i32 = arith.constant 0 : i32
    %c0_i32_0 = arith.constant 0 : i32
    return %arg0, %c0_i32 : i32, i32
  }
}

module attributes {stable_mosaic.version = 11 : i64} {
  func.func @_mlp_fused_kernel(%arg0: i32, %arg1: memref<32x128xf32, #tpu.memory_space<vmem>>, %arg2: memref<128x128xbf16, #tpu.memory_space<vmem>>, %arg3: memref<1x128xf32, #tpu.memory_space<vmem>>, %arg4: memref<128x128xbf16, #tpu.memory_space<vmem>>, %arg5: memref<1x128xf32, #tpu.memory_space<vmem>>, %arg6: memref<128x128xbf16, #tpu.memory_space<vmem>>, %arg7: memref<1x128xf32, #tpu.memory_space<vmem>>, %arg8: memref<32x128xf32, #tpu.memory_space<vmem>>) attributes {dimension_semantics = [#tpu.dimension_semantics<parallel>], iteration_bounds = array<i64: 2>, scalar_prefetch = 0 : i64, scratch_operands = 0 : i64, tpu.core_type = #tpu.core_type<tc>, window_params = [{transform_indices = @transform_0, window_bounds = array<i64: 32, 128>}, {pipeline_mode = #tpu.pipeline_mode<synchronous>, transform_indices = @transform_1, window_bounds = array<i64: 128, 128>}, {pipeline_mode = #tpu.pipeline_mode<synchronous>, transform_indices = @transform_2, window_bounds = array<i64: 1, 128>}, {pipeline_mode = #tpu.pipeline_mode<synchronous>, transform_indices = @transform_3, window_bounds = array<i64: 128, 128>}, {pipeline_mode = #tpu.pipeline_mode<synchronous>, transform_indices = @transform_4, window_bounds = array<i64: 1, 128>}, {pipeline_mode = #tpu.pipeline_mode<synchronous>, transform_indices = @transform_5, window_bounds = array<i64: 128, 128>}, {pipeline_mode = #tpu.pipeline_mode<synchronous>, transform_indices = @transform_6, window_bounds = array<i64: 1, 128>}, {transform_indices = @transform_7, window_bounds = array<i64: 32, 128>}]} {
    %c0 = arith.constant 0 : index
    %c0_0 = arith.constant 0 : index
    %0 = vector.load %arg1[%c0, %c0_0] : memref<32x128xf32, #tpu.memory_space<vmem>>, vector<32x128xf32>
    %1 = arith.truncf %0 : vector<32x128xf32> to vector<32x128xbf16>
    %c0_1 = arith.constant 0 : index
    %c0_2 = arith.constant 0 : index
    %2 = vector.load %arg2[%c0_1, %c0_2] : memref<128x128xbf16, #tpu.memory_space<vmem>>, vector<128x128xbf16>
    %cst = arith.constant dense<0.000000e+00> : vector<32x128xf32>
    %3 = tpu.matmul %1, %2, %cst {dimension_numbers = #tpu.dot_dimension_numbers<[1], [0], [0], [1], [0, 0, 1, 1], [], []>} : vector<32x128xbf16>, vector<128x128xbf16>, vector<32x128xf32> -> vector<32x128xf32>
    %c0_3 = arith.constant 0 : index
    %c0_4 = arith.constant 0 : index
    %4 = vector.load %arg3[%c0_3, %c0_4] : memref<1x128xf32, #tpu.memory_space<vmem>>, vector<1x128xf32>
    %5 = vector.broadcast %4 : vector<1x128xf32> to vector<32x128xf32>
    %6 = arith.addf %3, %5 : vector<32x128xf32>
    %cst_5 = arith.constant 0.000000e+00 : f32
    %7 = vector.broadcast %cst_5 : f32 to vector<32x128xf32>
    %8 = arith.maximumf %6, %7 : vector<32x128xf32>
    %9 = arith.truncf %8 : vector<32x128xf32> to vector<32x128xbf16>
    %c0_6 = arith.constant 0 : index
    %c0_7 = arith.constant 0 : index
    %10 = vector.load %arg4[%c0_6, %c0_7] : memref<128x128xbf16, #tpu.memory_space<vmem>>, vector<128x128xbf16>
    %cst_8 = arith.constant dense<0.000000e+00> : vector<32x128xf32>
    %11 = tpu.matmul %9, %10, %cst_8 {dimension_numbers = #tpu.dot_dimension_numbers<[1], [0], [0], [1], [0, 0, 1, 1], [], []>} : vector<32x128xbf16>, vector<128x128xbf16>, vector<32x128xf32> -> vector<32x128xf32>
    %c0_9 = arith.constant 0 : index
    %c0_10 = arith.constant 0 : index
    %12 = vector.load %arg5[%c0_9, %c0_10] : memref<1x128xf32, #tpu.memory_space<vmem>>, vector<1x128xf32>
    %13 = vector.broadcast %12 : vector<1x128xf32> to vector<32x128xf32>
    %14 = arith.addf %11, %13 : vector<32x128xf32>
    %cst_11 = arith.constant 0.000000e+00 : f32
    %15 = vector.broadcast %cst_11 : f32 to vector<32x128xf32>
    %16 = arith.maximumf %14, %15 : vector<32x128xf32>
    %17 = arith.truncf %16 : vector<32x128xf32> to vector<32x128xbf16>
    %c0_12 = arith.constant 0 : index
    %c0_13 = arith.constant 0 : index
    %18 = vector.load %arg6[%c0_12, %c0_13] : memref<128x128xbf16, #tpu.memory_space<vmem>>, vector<128x128xbf16>
    %cst_14 = arith.constant dense<0.000000e+00> : vector<32x128xf32>
    %19 = tpu.matmul %17, %18, %cst_14 {dimension_numbers = #tpu.dot_dimension_numbers<[1], [0], [0], [1], [0, 0, 1, 1], [], []>} : vector<32x128xbf16>, vector<128x128xbf16>, vector<32x128xf32> -> vector<32x128xf32>
    %c0_15 = arith.constant 0 : index
    %c0_16 = arith.constant 0 : index
    %20 = vector.load %arg7[%c0_15, %c0_16] : memref<1x128xf32, #tpu.memory_space<vmem>>, vector<1x128xf32>
    %21 = vector.broadcast %20 : vector<1x128xf32> to vector<32x128xf32>
    %22 = arith.addf %19, %21 : vector<32x128xf32>
    %c0_17 = arith.constant 0 : index
    %c0_18 = arith.constant 0 : index
    %23 = vector.load %arg8[%c0_17, %c0_18] : memref<32x128xf32, #tpu.memory_space<vmem>>, vector<32x128xf32>
    tpu.vector_store %arg8[%c0_17, %c0_18], %22 {strides = array<i32>} : memref<32x128xf32, #tpu.memory_space<vmem>>, vector<32x128xf32>,
    return
  }
  func.func @transform_0(%arg0: i32) -> (i32, i32) {
    %c0_i32 = arith.constant 0 : i32
    %c0_i32_0 = arith.constant 0 : i32
    return %arg0, %c0_i32 : i32, i32
  }
  func.func @transform_1(%arg0: i32) -> (i32, i32) {
    %c0_i32 = arith.constant 0 : i32
    %c0_i32_0 = arith.constant 0 : i32
    %c0_i32_1 = arith.constant 0 : i32
    return %c0_i32, %c0_i32_0 : i32, i32
  }
  func.func @transform_2(%arg0: i32) -> (i32, i32) {
    %c0_i32 = arith.constant 0 : i32
    %c0_i32_0 = arith.constant 0 : i32
    %c0_i32_1 = arith.constant 0 : i32
    return %c0_i32, %c0_i32_0 : i32, i32
  }
  func.func @transform_3(%arg0: i32) -> (i32, i32) {
    %c0_i32 = arith.constant 0 : i32
    %c0_i32_0 = arith.constant 0 : i32
    %c0_i32_1 = arith.constant 0 : i32
    return %c0_i32, %c0_i32_0 : i32, i32
  }
  func.func @transform_4(%arg0: i32) -> (i32, i32) {
    %c0_i32 = arith.constant 0 : i32
    %c0_i32_0 = arith.constant 0 : i32
    %c0_i32_1 = arith.constant 0 : i32
    return %c0_i32, %c0_i32_0 : i32, i32
  }
  func.func @transform_5(%arg0: i32) -> (i32, i32) {
    %c0_i32 = arith.constant 0 : i32
    %c0_i32_0 = arith.constant 0 : i32
    %c0_i32_1 = arith.constant 0 : i32
    return %c0_i32, %c0_i32_0 : i32, i32
  }
  func.func @transform_6(%arg0: i32) -> (i32, i32) {
    %c0_i32 = arith.constant 0 : i32
    %c0_i32_0 = arith.constant 0 : i32
    %c0_i32_1 = arith.constant 0 : i32
    return %c0_i32, %c0_i32_0 : i32, i32
  }
  func.func @transform_7(%arg0: i32) -> (i32, i32) {
    %c0_i32 = arith.constant 0 : i32
    %c0_i32_0 = arith.constant 0 : i32
    return %arg0, %c0_i32 : i32, i32
  }
}

</mosaic_0001>

<bundles_post_ra>
// kernel: mlp_forward.1
= control target key start
LH: loop header
LB: loop body
LE: loop exit
PB: predicated region body
PF: predicated region fallthrough
CT: control target
= control target key end

     0   :  { %s929_s24 = smov 0   ;;  %s1040_s0 = inlined_call_operand.vmem [shape: f32[64,128], index: 0, kind: input, shape index: {}]   ;;  %s1041_s1 = inlined_call_operand.vmem [shape: bf16[128,128], index: 1, kind: input, shape index: {}]   ;;  %s1042_s2 = inlined_call_operand.vmem [shape: f32[1,128], index: 2, kind: input, shape index: {}]   ;;  %s1043_s3 = inlined_call_operand.vmem [shape: bf16[128,128], index: 3, kind: input, shape index: {}]   ;;  %s1044_s4 = inlined_call_operand.vmem [shape: f32[1,128], index: 4, kind: input, shape index: {}]   ;;  %s1045_s5 = inlined_call_operand.vmem [shape: bf16[128,128], index: 5, kind: input, shape index: {}]   ;;  %s1046_s6 = inlined_call_operand.vmem [shape: f32[1,128], index: 6, kind: input, shape index: {}]   ;;  %s1047_s7 = inlined_call_operand.vmem [shape: f32[64,128], index: 7, kind: output, shape index: {}]  }
   0x1 LB: > { %s721_s25 = sadd.s32 4294967295, %s887_s24   ;;  %p725_p0 = scmp.ge.s32.totalorder %s887_s24, 1  ;;  %s887_s24 = sphi %s929_s24, %s17_s24  }
   0x2   : > { %p238_p1 = scmp.lt.s32.totalorder %s887_s24, 3 }
   0x4   : > { %p239_p2 = pnand %p725_p0, %p238_p1 }
   0x5   : > { %v857_v0 = vld [vmem:[%s1041_s1] sm:$0xff] (!%p239_p2)   ;;  %s726_s28 = sshll.u32 (!%p239_p2), %s721_s25, 2  ;;  %v858_v1 = vld [vmem:[%s1041_s1 + $0x8] sm:$0xff] (!%p239_p2)   ;;  %v859_v2 = vld [vmem:[%s1041_s1 + $0x10] sm:$0xff] (!%p239_p2)  }
   0x6   : > { %242 = sbr.rel (%p239_p2) target bundleno = 700 (0x2bc), region = 48  ;;  %p271_p3 = scmp.lt.s32.totalorder (!%p239_p2), %s726_s28, 7  ;;  %789 = vmatprep.subr.bf16.mxu0 (!%p239_p2), %v857_v0  ;;  %v860_v3 = vld [vmem:[%s1041_s1 + $0x18] sm:$0xff] (!%p239_p2)   ;;  %v865_v7 = vld [vmem:[%s1043_s3] sm:$0xff] (!%p239_p2)   ;;  %v866_v8 = vld [vmem:[%s1043_s3 + $0x8] sm:$0xff] (!%p239_p2)  }
   0x7   : > { %790 = vmatpush3.bf16.msra.mxu0 (!%p239_p2), %v857_v0  ;;  %v861_v9 = vld [vmem:[%s1041_s1 + $0x20] sm:$0xff] (!%p239_p2)   ;;  %809 = vmatprep.subr.bf16.mxu1 (!%p239_p2), %v865_v7  ;;  %v867_v10 = vld [vmem:[%s1043_s3 + $0x10] sm:$0xff] (!%p239_p2)   ;;  %v862_v11 = vld [vmem:[%s1041_s1 + $0x28] sm:$0xff] (!%p239_p2)  }
   0x8   : > { %791 = vmatprep.subr.bf16.mxu0 (!%p239_p2), %v858_v1  ;;  %810 = vmatpush3.bf16.msra.mxu1 (!%p239_p2), %v865_v7  ;;  %v868_v12 = vld [vmem:[%s1043_s3 + $0x18] sm:$0xff] (!%p239_p2)   ;;  %v863_v13 = vld [vmem:[%s1041_s1 + $0x30] sm:$0xff] (!%p239_p2)   ;;  %v869_v14 = vld [vmem:[%s1043_s3 + $0x20] sm:$0xff] (!%p239_p2)  }
   0x9   : > { %811 = vmatprep.subr.bf16.mxu1 (!%p239_p2), %v866_v8  ;;  %v864_v15 = vld [vmem:[%s1041_s1 + $0x38] sm:$0xff] (!%p239_p2)   ;;  %v870_v16 = vld [vmem:[%s1043_s3 + $0x28] sm:$0xff] (!%p239_p2)   ;;  %v871_v20 = vld [vmem:[%s1043_s3 + $0x30] sm:$0xff] (!%p239_p2)  }
   0xa   : > { %v872_v21 = vld [vmem:[%s1043_s3 + $0x38] sm:$0xff] (!%p239_p2)   ;;  %v873_v22 = vld [vmem:[%s1045_s5] sm:$0xff] (!%p239_p2)   ;;  %v874_v23 = vld [vmem:[%s1045_s5 + $0x8] sm:$0xff] (!%p239_p2)  }
   0xb   : > { %792 = vmatpush3.bf16.msra.mxu0 (!%p239_p2), %v858_v1  ;;  %v875_v24 = vld [vmem:[%s1045_s5 + $0x10] sm:$0xff] (!%p239_p2)   ;;  %v876_v25 = vld [vmem:[%s1045_s5 + $0x18] sm:$0xff] (!%p239_p2)   ;;  %v877_v26 = vld [vmem:[%s1045_s5 + $0x20] sm:$0xff] (!%p239_p2)  }
   0xc   : > { %793 = vmatprep.subr.bf16.mxu0 (!%p239_p2), %v859_v2  ;;  %812 = vmatpush3.bf16.msra.mxu1 (!%p239_p2), %v866_v8  ;;  %v878_v27 = vld [vmem:[%s1045_s5 + $0x28] sm:$0xff] (!%p239_p2)   ;;  %v730_v28 = vld [vmem:[%s1042_s2] ss:$0 sm:$0xff] (!%p239_p2)  ;;  %v879_v43 = vld [vmem:[%s1045_s5 + $0x30] sm:$0xff] (!%p239_p2)  }
   0xd   : > { %s1049_s28 = smov (!%p271_p3, %s726_s28), 7  ;;  %813 = vmatprep.subr.bf16.mxu1 %v867_v10  ;;  %v880_v44 = vld [vmem:[%s1045_s5 + $0x38] sm:$0xff]   ;;  %v739_v45 = vld [vmem:[%s1044_s4] ss:$0 sm:$0xff] }
   0xe   : > { %s727_s10 = sshll.u32 %s1049_s28, 3  ;;  %v748_v60 = vld [vmem:[%s1046_s6] ss:$0 sm:$0xff] }
   0xf   : > { %s954_s13 = scalar_lea.vmem %s1040_s0, %s727_s10  ;;  %794 = vmatpush3.bf16.msra.mxu0 %v859_v2  ;;  %s280_s25 = scalar_lea.vmem %s1047_s7, %s727_s10 }
  0x10   : > { %v283_v4 = vld [vmem:[%s954_s13] sm:$0xff]  ;;  %v284_v5 = vld [vmem:[%s954_s13 + $0x8] sm:$0xff]  ;;  %795 = vmatprep.subr.bf16.mxu0 %v860_v3  ;;  %814 = vmatpush3.bf16.msra.mxu1 %v867_v10  ;;  %v285_v17 = vld [vmem:[%s954_s13 + $0x10] sm:$0xff] }
  0x11   : > { %v287_v6 = vpack.c.bf16 %v284_v5, %v283_v4  ;;  %815 = vmatprep.subr.bf16.mxu1 %v868_v12  ;;  %v286_v18 = vld [vmem:[%s954_s13 + $0x18] sm:$0xff] }
  0x12   : > { %v288_v19 = vpack.c.bf16 %v286_v18, %v285_v17 }
  0x13   : > { %805 = vmatprep.mubr.bf16.mxu0 %v287_v6  ;;  %796 = vmatpush3.bf16.msra.mxu0 %v860_v3 }
  0x14   : > { %797 = vmatprep.subr.bf16.mxu0 %v861_v9  ;;  %816 = vmatpush3.bf16.msra.mxu1 %v868_v12 }
  0x15   : > { %817 = vmatprep.subr.bf16.mxu1 %v869_v14 }
  0x17   : > { %798 = vmatpush3.bf16.msra.mxu0 %v861_v9 }
  0x18   : > { %799 = vmatprep.subr.bf16.mxu0 %v862_v11  ;;  %818 = vmatpush3.bf16.msra.mxu1 %v869_v14 }
  0x19   : > { %819 = vmatprep.subr.bf16.mxu1 %v870_v16 }
  0x1b   : > { %800 = vmatpush3.bf16.msra.mxu0 %v862_v11 }
  0x1c   : > { %801 = vmatprep.subr.bf16.mxu0 %v863_v13  ;;  %820 = vmatpush3.bf16.msra.mxu1 %v870_v16 }
  0x1d   : > { %821 = vmatprep.subr.bf16.mxu1 %v871_v20 }
  0x1f   : > { %802 = vmatpush3.bf16.msra.mxu0 %v863_v13 }
  0x20   : > { %803 = vmatprep.subr.bf16.mxu0 %v864_v15  ;;  %822 = vmatpush3.bf16.msra.mxu1 %v871_v20 }
  0x21   : > { %823 = vmatprep.subr.bf16.mxu1 %v872_v21 }
  0x23   : > { %804 = vmatpush3.bf16.msra.mxu0 %v864_v15 }
  0x24   : > { %824 = vmatpush3.bf16.msra.mxu1 %v872_v21  ;;  %829 = vmatprep.subr.bf16.mxu0 %v873_v22 }
  0x26   : > { %806 = vmatmul.mubr.bf16.vlgmr.msra.gmra.mrb[0].mxu0 %v288_v19 }
  0x27   : > { %830 = vmatpush3.bf16.msra.mxu0 %v873_v22 }
  0x28   : > { %831 = vmatprep.subr.bf16.mxu0 %v874_v23 }
  0x2b   : > { %832 = vmatpush3.bf16.msra.mxu0 %v874_v23 }
  0x2c   : > { %833 = vmatprep.subr.bf16.mxu0 %v875_v24 }
  0x2f   : > { %834 = vmatpush3.bf16.msra.mxu0 %v875_v24 }
  0x30   : > { %835 = vmatprep.subr.bf16.mxu0 %v876_v25 }
  0x33   : > { %836 = vmatpush3.bf16.msra.mxu0 %v876_v25 }
  0x34   : > { %837 = vmatprep.subr.bf16.mxu0 %v877_v26 }
  0x37   : > { %838 = vmatpush3.bf16.msra.mxu0 %v877_v26 }
  0x38   : > { %839 = vmatprep.subr.bf16.mxu0 %v878_v27 }
  0x3b   : > { %840 = vmatpush3.bf16.msra.mxu0 %v878_v27 }
  0x3c   : > { %841 = vmatprep.subr.bf16.mxu0 %v879_v43 }
  0x3f   : > { %842 = vmatpush3.bf16.msra.mxu0 %v879_v43 }
  0x40   : > { %843 = vmatprep.subr.bf16.mxu0 %v880_v44 }
  0x43   : > { %844 = vmatpush3.bf16.msra.mxu0 %v880_v44 }
  0xf9   : > { %v807_v29 = vpop.f32.mrb[0].mxu0 }
  0xfa   : > { %v403_v30 = vadd.f32 %v807_v29, %v730_v28  ;;  %v394_v31 = vpop.f32.mrb[1].mxu0 }
  0xfb   : > { %v395_v32 = vadd.f32 %v730_v28, %v394_v31  ;;  %v808_v33 = vpop.f32.mrb[2].mxu0 }
  0xfc   : > { %v406_v34 = vadd.f32 %v808_v33, %v730_v28  ;;  %v397_v35 = vpop.f32.mrb[3].mxu0  ;;  %v411_v37 = vmax.f32 %v403_v30, 0.0 }
  0xfd   : > { %v398_v36 = vadd.f32 %v730_v28, %v397_v35  ;;  %v409_v39 = vmax.f32 %v395_v32, 0.0 }
  0xfe   : > { %v412_v38 = vmax.f32 %v406_v34, 0.0 }
  0xff   : > { %v410_v40 = vmax.f32 %v398_v36, 0.0 }
 0x100   : > { %v414_v41 = vpack.c.bf16 %v412_v38, %v411_v37 }
 0x101   : > { %v413_v42 = vpack.c.bf16 %v410_v40, %v409_v39 }
 0x103   : > { %825 = vmatprep.mubr.bf16.mxu1 %v413_v42 }
 0x104   : > { %826 = vmatmul.mubr.bf16.vlgmr.msra.gmra.mrb[0].mxu1 %v414_v41 }
 0x1d7   : > { %v827_v46 = vpop.f32.mrb[0].mxu1 }
 0x1d8   : > { %v529_v47 = vadd.f32 %v827_v46, %v739_v45  ;;  %v520_v48 = vpop.f32.mrb[1].mxu1 }
 0x1d9   : > { %v521_v49 = vadd.f32 %v739_v45, %v520_v48  ;;  %v828_v50 = vpop.f32.mrb[2].mxu1 }
 0x1da   : > { %v532_v51 = vadd.f32 %v828_v50, %v739_v45  ;;  %v523_v52 = vpop.f32.mrb[3].mxu1  ;;  %v537_v54 = vmax.f32 %v529_v47, 0.0 }
 0x1db   : > { %v524_v53 = vadd.f32 %v739_v45, %v523_v52  ;;  %v535_v56 = vmax.f32 %v521_v49, 0.0 }
 0x1dc   : > { %v538_v55 = vmax.f32 %v532_v51, 0.0 }
 0x1dd   : > { %v536_v57 = vmax.f32 %v524_v53, 0.0 }
 0x1de   : > { %v540_v58 = vpack.c.bf16 %v538_v55, %v537_v54 }
 0x1df   : > { %v539_v59 = vpack.c.bf16 %v536_v57, %v535_v56 }
 0x1e1   : > { %845 = vmatprep.mubr.bf16.mxu0 %v539_v59 }
 0x1e2   : > { %846 = vmatmul.mubr.bf16.vlgmr.msra.gmra.mrb[4].mxu0 %v540_v58 }
 0x2b5   : > { %v847_v61 = vpop.f32.mrb[4].mxu0 }
 0x2b6   : > { %v646_v62 = vpop.f32.mrb[5].mxu0  ;;  %v655_v3 = vadd.f32 %v847_v61, %v748_v60 }
 0x2b7   : > { %v647_v63 = vadd.f32 %v748_v60, %v646_v62  ;;  %v848_v0 = vpop.f32.mrb[6].mxu0 }
 0x2b8   : > { %v649_v1 = vpop.f32.mrb[7].mxu0  ;;  %v658_v4 = vadd.f32 %v848_v0, %v748_v60  ;;  %663 = vst [vmem:[%s280_s25 + $0x10] sm:$0xff] %v655_v3 }
 0x2b9   : > { %661 = vst [vmem:[%s280_s25] sm:$0xff] %v647_v63  ;;  %v650_v2 = vadd.f32 %v748_v60, %v649_v1 }
 0x2ba   : > { %664 = vst [vmem:[%s280_s25 + $0x18] sm:$0xff] %v658_v4 }
 0x2bb   : > { %662 = vst [vmem:[%s280_s25 + $0x8] sm:$0xff] %v650_v2 }
 0x2bc PF: > { %s17_s24 = sadd.s32 1, %s887_s24  }
 0x2bd   : > { %p14_p4 = scmp.ge.s32.totalorder %s17_s24, 4  }
 0x2bf   :  { %16 = sbr.rel (!%p14_p4) target bundleno = 1 (0x1), region = 78 }

// kernel: mlp_forward.1
= control target key start
LH: loop header
LB: loop body
LE: loop exit
PB: predicated region body
PF: predicated region fallthrough
CT: control target
= control target key end

     0   :  { %s929_s24 = smov 0   ;;  %s1040_s0 = inlined_call_operand.vmem [shape: f32[64,128], index: 0, kind: input, shape index: {}]   ;;  %s1041_s1 = inlined_call_operand.vmem [shape: bf16[128,128], index: 1, kind: input, shape index: {}]   ;;  %s1042_s2 = inlined_call_operand.vmem [shape: f32[1,128], index: 2, kind: input, shape index: {}]   ;;  %s1043_s3 = inlined_call_operand.vmem [shape: bf16[128,128], index: 3, kind: input, shape index: {}]   ;;  %s1044_s4 = inlined_call_operand.vmem [shape: f32[1,128], index: 4, kind: input, shape index: {}]   ;;  %s1045_s5 = inlined_call_operand.vmem [shape: bf16[128,128], index: 5, kind: input, shape index: {}]   ;;  %s1046_s6 = inlined_call_operand.vmem [shape: f32[1,128], index: 6, kind: input, shape index: {}]   ;;  %s1047_s7 = inlined_call_operand.vmem [shape: f32[64,128], index: 7, kind: output, shape index: {}]  }
   0x1 LB: > { %s721_s25 = sadd.s32 4294967295, %s887_s24   ;;  %p725_p0 = scmp.ge.s32.totalorder %s887_s24, 1  ;;  %s887_s24 = sphi %s929_s24, %s17_s24  }
   0x2   : > { %p238_p1 = scmp.lt.s32.totalorder %s887_s24, 3 }
   0x4   : > { %p239_p2 = pnand %p725_p0, %p238_p1 }
   0x5   : > { %v857_v0 = vld [vmem:[%s1041_s1] sm:$0xff] (!%p239_p2)   ;;  %s726_s28 = sshll.u32 (!%p239_p2), %s721_s25, 2  ;;  %v858_v1 = vld [vmem:[%s1041_s1 + $0x8] sm:$0xff] (!%p239_p2)   ;;  %v859_v2 = vld [vmem:[%s1041_s1 + $0x10] sm:$0xff] (!%p239_p2)  }
   0x6   : > { %242 = sbr.rel (%p239_p2) target bundleno = 700 (0x2bc), region = 48  ;;  %p271_p3 = scmp.lt.s32.totalorder (!%p239_p2), %s726_s28, 7  ;;  %789 = vmatprep.subr.bf16.mxu0 (!%p239_p2), %v857_v0  ;;  %v860_v3 = vld [vmem:[%s1041_s1 + $0x18] sm:$0xff] (!%p239_p2)   ;;  %v865_v7 = vld [vmem:[%s1043_s3] sm:$0xff] (!%p239_p2)   ;;  %v866_v8 = vld [vmem:[%s1043_s3 + $0x8] sm:$0xff] (!%p239_p2)  }
   0x7   : > { %790 = vmatpush3.bf16.msra.mxu0 (!%p239_p2), %v857_v0  ;;  %v861_v9 = vld [vmem:[%s1041_s1 + $0x20] sm:$0xff] (!%p239_p2)   ;;  %809 = vmatprep.subr.bf16.mxu1 (!%p239_p2), %v865_v7  ;;  %v867_v10 = vld [vmem:[%s1043_s3 + $0x10] sm:$0xff] (!%p239_p2)   ;;  %v862_v11 = vld [vmem:[%s1041_s1 + $0x28] sm:$0xff] (!%p239_p2)  }
   0x8   : > { %791 = vmatprep.subr.bf16.mxu0 (!%p239_p2), %v858_v1  ;;  %810 = vmatpush3.bf16.msra.mxu1 (!%p239_p2), %v865_v7  ;;  %v868_v12 = vld [vmem:[%s1043_s3 + $0x18] sm:$0xff] (!%p239_p2)   ;;  %v863_v13 = vld [vmem:[%s1041_s1 + $0x30] sm:$0xff] (!%p239_p2)   ;;  %v869_v14 = vld [vmem:[%s1043_s3 + $0x20] sm:$0xff] (!%p239_p2)  }
   0x9   : > { %811 = vmatprep.subr.bf16.mxu1 (!%p239_p2), %v866_v8  ;;  %v864_v15 = vld [vmem:[%s1041_s1 + $0x38] sm:$0xff] (!%p239_p2)   ;;  %v870_v16 = vld [vmem:[%s1043_s3 + $0x28] sm:$0xff] (!%p239_p2)   ;;  %v871_v20 = vld [vmem:[%s1043_s3 + $0x30] sm:$0xff] (!%p239_p2)  }
   0xa   : > { %v872_v21 = vld [vmem:[%s1043_s3 + $0x38] sm:$0xff] (!%p239_p2)   ;;  %v873_v22 = vld [vmem:[%s1045_s5] sm:$0xff] (!%p239_p2)   ;;  %v874_v23 = vld [vmem:[%s1045_s5 + $0x8] sm:$0xff] (!%p239_p2)  }
   0xb   : > { %792 = vmatpush3.bf16.msra.mxu0 (!%p239_p2), %v858_v1  ;;  %v875_v24 = vld [vmem:[%s1045_s5 + $0x10] sm:$0xff] (!%p239_p2)   ;;  %v876_v25 = vld [vmem:[%s1045_s5 + $0x18] sm:$0xff] (!%p239_p2)   ;;  %v877_v26 = vld [vmem:[%s1045_s5 + $0x20] sm:$0xff] (!%p239_p2)  }
   0xc   : > { %793 = vmatprep.subr.bf16.mxu0 (!%p239_p2), %v859_v2  ;;  %812 = vmatpush3.bf16.msra.mxu1 (!%p239_p2), %v866_v8  ;;  %v878_v27 = vld [vmem:[%s1045_s5 + $0x28] sm:$0xff] (!%p239_p2)   ;;  %v730_v28 = vld [vmem:[%s1042_s2] ss:$0 sm:$0xff] (!%p239_p2)  ;;  %v879_v43 = vld [vmem:[%s1045_s5 + $0x30] sm:$0xff] (!%p239_p2)  }
   0xd   : > { %s1049_s28 = smov (!%p271_p3, %s726_s28), 7  ;;  %813 = vmatprep.subr.bf16.mxu1 %v867_v10  ;;  %v880_v44 = vld [vmem:[%s1045_s5 + $0x38] sm:$0xff]   ;;  %v739_v45 = vld [vmem:[%s1044_s4] ss:$0 sm:$0xff] }
   0xe   : > { %s727_s10 = sshll.u32 %s1049_s28, 3  ;;  %v748_v60 = vld [vmem:[%s1046_s6] ss:$0 sm:$0xff] }
   0xf   : > { %s954_s13 = scalar_lea.vmem %s1040_s0, %s727_s10  ;;  %794 = vmatpush3.bf16.msra.mxu0 %v859_v2  ;;  %s280_s25 = scalar_lea.vmem %s1047_s7, %s727_s10 }
  0x10   : > { %v283_v4 = vld [vmem:[%s954_s13] sm:$0xff]  ;;  %v284_v5 = vld [vmem:[%s954_s13 + $0x8] sm:$0xff]  ;;  %795 = vmatprep.subr.bf16.mxu0 %v860_v3  ;;  %814 = vmatpush3.bf16.msra.mxu1 %v867_v10  ;;  %v285_v17 = vld [vmem:[%s954_s13 + $0x10] sm:$0xff] }
  0x11   : > { %v287_v6 = vpack.c.bf16 %v284_v5, %v283_v4  ;;  %815 = vmatprep.subr.bf16.mxu1 %v868_v12  ;;  %v286_v18 = vld [vmem:[%s954_s13 + $0x18] sm:$0xff] }
  0x12   : > { %v288_v19 = vpack.c.bf16 %v286_v18, %v285_v17 }
  0x13   : > { %805 = vmatprep.mubr.bf16.mxu0 %v287_v6  ;;  %796 = vmatpush3.bf16.msra.mxu0 %v860_v3 }
  0x14   : > { %797 = vmatprep.subr.bf16.mxu0 %v861_v9  ;;  %816 = vmatpush3.bf16.msra.mxu1 %v868_v12 }
  0x15   : > { %817 = vmatprep.subr.bf16.mxu1 %v869_v14 }
  0x17   : > { %798 = vmatpush3.bf16.msra.mxu0 %v861_v9 }
  0x18   : > { %799 = vmatprep.subr.bf16.mxu0 %v862_v11  ;;  %818 = vmatpush3.bf16.msra.mxu1 %v869_v14 }
  0x19   : > { %819 = vmatprep.subr.bf16.mxu1 %v870_v16 }
  0x1b   : > { %800 = vmatpush3.bf16.msra.mxu0 %v862_v11 }
  0x1c   : > { %801 = vmatprep.subr.bf16.mxu0 %v863_v13  ;;  %820 = vmatpush3.bf16.msra.mxu1 %v870_v16 }
  0x1d   : > { %821 = vmatprep.subr.bf16.mxu1 %v871_v20 }
  0x1f   : > { %802 = vmatpush3.bf16.msra.mxu0 %v863_v13 }
  0x20   : > { %803 = vmatprep.subr.bf16.mxu0 %v864_v15  ;;  %822 = vmatpush3.bf16.msra.mxu1 %v871_v20 }
  0x21   : > { %823 = vmatprep.subr.bf16.mxu1 %v872_v21 }
  0x23   : > { %804 = vmatpush3.bf16.msra.mxu0 %v864_v15 }
  0x24   : > { %824 = vmatpush3.bf16.msra.mxu1 %v872_v21  ;;  %829 = vmatprep.subr.bf16.mxu0 %v873_v22 }
  0x26   : > { %806 = vmatmul.mubr.bf16.vlgmr.msra.gmra.mrb[0].mxu0 %v288_v19 }
  0x27   : > { %830 = vmatpush3.bf16.msra.mxu0 %v873_v22 }
  0x28   : > { %831 = vmatprep.subr.bf16.mxu0 %v874_v23 }
  0x2b   : > { %832 = vmatpush3.bf16.msra.mxu0 %v874_v23 }
  0x2c   : > { %833 = vmatprep.subr.bf16.mxu0 %v875_v24 }
  0x2f   : > { %834 = vmatpush3.bf16.msra.mxu0 %v875_v24 }
  0x30   : > { %835 = vmatprep.subr.bf16.mxu0 %v876_v25 }
  0x33   : > { %836 = vmatpush3.bf16.msra.mxu0 %v876_v25 }
  0x34   : > { %837 = vmatprep.subr.bf16.mxu0 %v877_v26 }
  0x37   : > { %838 = vmatpush3.bf16.msra.mxu0 %v877_v26 }
  0x38   : > { %839 = vmatprep.subr.bf16.mxu0 %v878_v27 }
  0x3b   : > { %840 = vmatpush3.bf16.msra.mxu0 %v878_v27 }
  0x3c   : > { %841 = vmatprep.subr.bf16.mxu0 %v879_v43 }
  0x3f   : > { %842 = vmatpush3.bf16.msra.mxu0 %v879_v43 }
  0x40   : > { %843 = vmatprep.subr.bf16.mxu0 %v880_v44 }
  0x43   : > { %844 = vmatpush3.bf16.msra.mxu0 %v880_v44 }
  0xf9   : > { %v807_v29 = vpop.f32.mrb[0].mxu0 }
  0xfa   : > { %v403_v30 = vadd.f32 %v807_v29, %v730_v28  ;;  %v394_v31 = vpop.f32.mrb[1].mxu0 }
  0xfb   : > { %v395_v32 = vadd.f32 %v730_v28, %v394_v31  ;;  %v808_v33 = vpop.f32.mrb[2].mxu0 }
  0xfc   : > { %v406_v34 = vadd.f32 %v808_v33, %v730_v28  ;;  %v397_v35 = vpop.f32.mrb[3].mxu0  ;;  %v411_v37 = vmax.f32 %v403_v30, 0.0 }
  0xfd   : > { %v398_v36 = vadd.f32 %v730_v28, %v397_v35  ;;  %v409_v39 = vmax.f32 %v395_v32, 0.0 }
  0xfe   : > { %v412_v38 = vmax.f32 %v406_v34, 0.0 }
  0xff   : > { %v410_v40 = vmax.f32 %v398_v36, 0.0 }
 0x100   : > { %v414_v41 = vpack.c.bf16 %v412_v38, %v411_v37 }
 0x101   : > { %v413_v42 = vpack.c.bf16 %v410_v40, %v409_v39 }
 0x103   : > { %825 = vmatprep.mubr.bf16.mxu1 %v413_v42 }
 0x104   : > { %826 = vmatmul.mubr.bf16.vlgmr.msra.gmra.mrb[0].mxu1 %v414_v41 }
 0x1d7   : > { %v827_v46 = vpop.f32.mrb[0].mxu1 }
 0x1d8   : > { %v529_v47 = vadd.f32 %v827_v46, %v739_v45  ;;  %v520_v48 = vpop.f32.mrb[1].mxu1 }
 0x1d9   : > { %v521_v49 = vadd.f32 %v739_v45, %v520_v48  ;;  %v828_v50 = vpop.f32.mrb[2].mxu1 }
 0x1da   : > { %v532_v51 = vadd.f32 %v828_v50, %v739_v45  ;;  %v523_v52 = vpop.f32.mrb[3].mxu1  ;;  %v537_v54 = vmax.f32 %v529_v47, 0.0 }
 0x1db   : > { %v524_v53 = vadd.f32 %v739_v45, %v523_v52  ;;  %v535_v56 = vmax.f32 %v521_v49, 0.0 }
 0x1dc   : > { %v538_v55 = vmax.f32 %v532_v51, 0.0 }
 0x1dd   : > { %v536_v57 = vmax.f32 %v524_v53, 0.0 }
 0x1de   : > { %v540_v58 = vpack.c.bf16 %v538_v55, %v537_v54 }
 0x1df   : > { %v539_v59 = vpack.c.bf16 %v536_v57, %v535_v56 }
 0x1e1   : > { %845 = vmatprep.mubr.bf16.mxu0 %v539_v59 }
 0x1e2   : > { %846 = vmatmul.mubr.bf16.vlgmr.msra.gmra.mrb[4].mxu0 %v540_v58 }
 0x2b5   : > { %v847_v61 = vpop.f32.mrb[4].mxu0 }
 0x2b6   : > { %v646_v62 = vpop.f32.mrb[5].mxu0  ;;  %v655_v3 = vadd.f32 %v847_v61, %v748_v60 }
 0x2b7   : > { %v647_v63 = vadd.f32 %v748_v60, %v646_v62  ;;  %v848_v0 = vpop.f32.mrb[6].mxu0 }
 0x2b8   : > { %v649_v1 = vpop.f32.mrb[7].mxu0  ;;  %v658_v4 = vadd.f32 %v848_v0, %v748_v60  ;;  %663 = vst [vmem:[%s280_s25 + $0x10] sm:$0xff] %v655_v3 }
 0x2b9   : > { %661 = vst [vmem:[%s280_s25] sm:$0xff] %v647_v63  ;;  %v650_v2 = vadd.f32 %v748_v60, %v649_v1 }
 0x2ba   : > { %664 = vst [vmem:[%s280_s25 + $0x18] sm:$0xff] %v658_v4 }
 0x2bb   : > { %662 = vst [vmem:[%s280_s25 + $0x8] sm:$0xff] %v650_v2 }
 0x2bc PF: > { %s17_s24 = sadd.s32 1, %s887_s24  }
 0x2bd   : > { %p14_p4 = scmp.ge.s32.totalorder %s17_s24, 4  }
 0x2bf   :  { %16 = sbr.rel (!%p14_p4) target bundleno = 1 (0x1), region = 78 }

</bundles_post_ra>
